<compile_context>
chip_gen: v6e
topology: v6e:2x2x1
jax: 0.10.0
libtpu: 0.0.40
codegen_flags: <defaults>
</compile_context>

<pallas_src>
import math

import jax
import jax.numpy as jnp
from jax.experimental import pallas as pl
from jax.experimental.pallas import tpu as pltpu


def _round_up(x: int, m: int) -> int:
    return (x + m - 1) // m * m


def _mlp_fused_kernel(x_ref, w1_ref, b1_ref, w2_ref, b2_ref, o_ref):
    """o = ReLU(ReLU(x @ W1 + b1) @ W2 + b2) for one row tile, fully in VMEM."""
    x = x_ref[...]                                     # (tm, K)  f32 or bf16
    w1 = w1_ref[...]                                   # (K, N1)  bf16

    # Layer 1: bf16 MXU matmul, f32 accumulation, f32 bias + ReLU.
    h = jnp.dot(x.astype(w1.dtype), w1, preferred_element_type=jnp.float32)
    h = jnp.maximum(h + b1_ref[...], 0.0)              # (tm, N1) f32, stays in VMEM

    # Layer 2: ch_out is tiny (often 1) -> matmul against the real, unpadded
    # (N1, N2) f32 weights; no zero-padded weight slab is streamed from HBM.
    y = jnp.dot(h, w2_ref[...].astype(jnp.float32),
                preferred_element_type=jnp.float32)    # (tm, N2) f32
    y = jnp.maximum(y + b2_ref[...], 0.0)

    o_ref[...] = y.astype(o_ref.dtype)


def prepare_mlp_params(fc1_w, fc1_b, fc2_w, fc2_b, *, layer1_dtype=jnp.bfloat16):
    """One-time conversion of PyTorch nn.Linear parameters into kernel layout.

    Call ONCE when parameters are loaded (not per forward) so transpose /
    dtype-cast / reshape ops never appear in the per-call path.

    fc1_w: (ch_mid, ch_in),  fc1_b: (ch_mid,)   -- PyTorch (out, in) layout
    fc2_w: (ch_out, ch_mid), fc2_b: (ch_out,)
    """
    w1 = jnp.asarray(fc1_w).T.astype(layer1_dtype)             # (ch_in, ch_mid) bf16
    b1 = jnp.asarray(fc1_b).reshape(1, -1).astype(jnp.float32)  # (1, ch_mid)
    # W2 is tiny (ch_mid x ch_out): keep it f32 and unpadded.
    w2 = jnp.asarray(fc2_w).T.astype(jnp.float32)               # (ch_mid, ch_out)
    b2 = jnp.asarray(fc2_b).reshape(1, -1).astype(jnp.float32)  # (1, ch_out)
    return w1, b1, w2, b2


def mlp_forward(x, params, *, tm_max=256):
    """Forward pass of MLP(ch_in, ch_mid, ch_out) as a single fused Pallas call.

    x      : (M, ch_in) f32 (or bf16 — halves activation DMA for big batches)
    params : output of prepare_mlp_params()
    Returns (M, ch_out) f32.
    """
    w1, b1, w2, b2 = params
    M, K = x.shape
    N1 = w1.shape[1]
    N2 = w2.shape[1]
    assert w1.shape[0] == K and b1.shape == (1, N1)
    assert w2.shape == (N1, N2) and b2.shape == (1, N2)

    # Pad M to the f32 sublane multiple (8) and to a whole number of row tiles
    # so every block load/store is full-width; padded rows are sliced off below
    # (rows are independent, so padding cannot contaminate real outputs).
    m8 = max(_round_up(M, 8), 8)
    if m8 <= tm_max:
        tm, mp = m8, m8
    else:
        tm = tm_max
        mp = _round_up(M, tm)
    if mp != M:
        x = jnp.pad(x, ((0, mp - M), (0, 0)))
    grid = (mp // tm,)

    wbytes = w1.dtype.itemsize
    cost = pl.CostEstimate(
        flops=2 * mp * K * N1 + 2 * mp * N1 * N2,
        transcendentals=0,
        bytes_accessed=int(x.size * x.dtype.itemsize + w1.size * wbytes
                           + b1.size * 4 + w2.size * 4 + b2.size * 4
                           + mp * N2 * 4),
    )

    out = pl.pallas_call(
        _mlp_fused_kernel,
        out_shape=jax.ShapeDtypeStruct((mp, N2), jnp.float32),
        grid=grid,
        in_specs=[
            pl.BlockSpec((tm, K), lambda i: (i, 0)),    # x : streamed row tiles
            pl.BlockSpec((K, N1), lambda i: (0, 0)),    # W1: VMEM-resident
            pl.BlockSpec((1, N1), lambda i: (0, 0)),    # b1: VMEM-resident
            pl.BlockSpec((N1, N2), lambda i: (0, 0)),   # W2: VMEM-resident
            pl.BlockSpec((1, N2), lambda i: (0, 0)),    # b2: VMEM-resident
        ],
        out_specs=pl.BlockSpec((tm, N2), lambda i: (i, 0)),
        compiler_params=pltpu.CompilerParams(
            dimension_semantics=("parallel",),          # lets v7x use both TCs
        ),
        cost_estimate=cost,
    )(x, w1, b1, w2, b2)

    return out if mp == M else out[:M]


def _mlp_reference(x, fc1_w, fc1_b, fc2_w, fc2_b):
    h = jnp.maximum(x @ fc1_w.T + fc1_b, 0.0)
    return jnp.maximum(h @ fc2_w.T + fc2_b, 0.0)


if __name__ == "__main__":
    # Small shapes consistent with how this MLP head is used (feature -> score).
    CH_IN, CH_MID, CH_OUT = 256, 128, 1

    key = jax.random.PRNGKey(0)
    k1, k2, k3, k4, kx1, kx2 = jax.random.split(key, 6)

    # PyTorch nn.Linear init: U(-1/sqrt(fan_in), 1/sqrt(fan_in)), weight (out, in).
    lim1 = 1.0 / math.sqrt(CH_IN)
    fc1_w = jax.random.uniform(k1, (CH_MID, CH_IN), jnp.float32, -lim1, lim1)
    fc1_b = jax.random.uniform(k2, (CH_MID,), jnp.float32, -lim1, lim1)
    lim2 = 1.0 / math.sqrt(CH_MID)
    fc2_w = jax.random.uniform(k3, (CH_OUT, CH_MID), jnp.float32, -lim2, lim2)
    fc2_b = jax.random.uniform(k4, (CH_OUT,), jnp.float32, -lim2, lim2)

    # One-time parameter preparation (hoisted out of the per-call path).
    params = prepare_mlp_params(fc1_w, fc1_b, fc2_w, fc2_b)

    fwd = jax.jit(mlp_forward)

    # Case 1: tiny batch (single tile, M padded 2 -> 8).
    # Case 2: larger batch (row-tiled: tm=256, grid=(2,), M padded 300 -> 512).
    for kx, batch in ((kx1, 2), (kx2, 300)):
        x = jax.random.normal(kx, (batch, CH_IN), jnp.float32)
        out = fwd(x, params)
        jax.block_until_ready(out)
        ref = _mlp_reference(x, fc1_w, fc1_b, fc2_w, fc2_b)
        assert out.shape == (batch, CH_OUT), out.shape
        assert bool(jnp.all(jnp.isfinite(out)))
        # Layer 1 runs bf16 on the MXU -> relaxed tolerance vs the f32 reference.
        assert bool(jnp.allclose(out, ref, rtol=3e-2, atol=3e-2)), (batch, out[:4], ref[:4])

    print("KERNEL_OK")
</pallas_src>

<mosaic_0001>
module attributes {stable_mosaic.version = 11 : i64} {
  func.func @_mlp_fused_kernel(%arg0: i32, %arg1: memref<8x256xf32, #tpu.memory_space<vmem>>, %arg2: memref<256x128xbf16, #tpu.memory_space<vmem>>, %arg3: memref<1x128xf32, #tpu.memory_space<vmem>>, %arg4: memref<128x1xf32, #tpu.memory_space<vmem>>, %arg5: memref<1x1xf32, #tpu.memory_space<vmem>>, %arg6: memref<8x1xf32, #tpu.memory_space<vmem>>) attributes {dimension_semantics = [#tpu.dimension_semantics<parallel>], iteration_bounds = array<i64: 1>, scalar_prefetch = 0 : i64, scratch_operands = 0 : i64, tpu.core_type = #tpu.core_type<tc>, window_params = [{transform_indices = @transform_0, window_bounds = array<i64: 8, 256>}, {pipeline_mode = #tpu.pipeline_mode<synchronous>, transform_indices = @transform_1, window_bounds = array<i64: 256, 128>}, {pipeline_mode = #tpu.pipeline_mode<synchronous>, transform_indices = @transform_2, window_bounds = array<i64: 1, 128>}, {pipeline_mode = #tpu.pipeline_mode<synchronous>, transform_indices = @transform_3, window_bounds = array<i64: 128, 1>}, {pipeline_mode = #tpu.pipeline_mode<synchronous>, transform_indices = @transform_4, window_bounds = array<i64: 1, 1>}, {transform_indices = @transform_5, window_bounds = array<i64: 8, 1>}]} {
    %c0 = arith.constant 0 : index
    %c0_0 = arith.constant 0 : index
    %0 = vector.load %arg1[%c0, %c0_0] : memref<8x256xf32, #tpu.memory_space<vmem>>, vector<8x256xf32>
    %c0_1 = arith.constant 0 : index
    %c0_2 = arith.constant 0 : index
    %1 = vector.load %arg2[%c0_1, %c0_2] : memref<256x128xbf16, #tpu.memory_space<vmem>>, vector<256x128xbf16>
    %2 = arith.truncf %0 : vector<8x256xf32> to vector<8x256xbf16>
    %cst = arith.constant dense<0.000000e+00> : vector<8x128xf32>
    %3 = tpu.matmul %2, %1, %cst {dimension_numbers = #tpu.dot_dimension_numbers<[1], [0], [0], [1], [0, 0, 1, 1], [], []>} : vector<8x256xbf16>, vector<256x128xbf16>, vector<8x128xf32> -> vector<8x128xf32>
    %c0_3 = arith.constant 0 : index
    %c0_4 = arith.constant 0 : index
    %4 = vector.load %arg3[%c0_3, %c0_4] : memref<1x128xf32, #tpu.memory_space<vmem>>, vector<1x128xf32>
    %5 = vector.broadcast %4 : vector<1x128xf32> to vector<8x128xf32>
    %6 = arith.addf %3, %5 : vector<8x128xf32>
    %cst_5 = arith.constant 0.000000e+00 : f32
    %7 = vector.broadcast %cst_5 : f32 to vector<8x128xf32>
    %8 = arith.maximumf %6, %7 : vector<8x128xf32>
    %c0_6 = arith.constant 0 : index
    %c0_7 = arith.constant 0 : index
    %9 = vector.load %arg4[%c0_6, %c0_7] : memref<128x1xf32, #tpu.memory_space<vmem>>, vector<128x1xf32>
    %cst_8 = arith.constant dense<0.000000e+00> : vector<8x1xf32>
    %10 = tpu.matmul %8, %9, %cst_8 {dimension_numbers = #tpu.dot_dimension_numbers<[1], [0], [0], [1], [0, 0, 1, 1], [], []>} : vector<8x128xf32>, vector<128x1xf32>, vector<8x1xf32> -> vector<8x1xf32>
    %c0_9 = arith.constant 0 : index
    %c0_10 = arith.constant 0 : index
    %11 = vector.load %arg5[%c0_9, %c0_10] : memref<1x1xf32, #tpu.memory_space<vmem>>, vector<1x1xf32>
    %12 = vector.broadcast %11 : vector<1x1xf32> to vector<8x1xf32>
    %13 = arith.addf %10, %12 : vector<8x1xf32>
    %cst_11 = arith.constant 0.000000e+00 : f32
    %14 = vector.broadcast %cst_11 : f32 to vector<8x1xf32>
    %15 = arith.maximumf %13, %14 : vector<8x1xf32>
    %c0_12 = arith.constant 0 : index
    %c0_13 = arith.constant 0 : index
    %16 = vector.load %arg6[%c0_12, %c0_13] : memref<8x1xf32, #tpu.memory_space<vmem>>, vector<8x1xf32>
    tpu.vector_store %arg6[%c0_12, %c0_13], %15 {strides = array<i32>} : memref<8x1xf32, #tpu.memory_space<vmem>>, vector<8x1xf32>,
    return
  }
  func.func @transform_0(%arg0: i32) -> (i32, i32) {
    %c0_i32 = arith.constant 0 : i32
    %c0_i32_0 = arith.constant 0 : i32
    return %arg0, %c0_i32 : i32, i32
  }
  func.func @transform_1(%arg0: i32) -> (i32, i32) {
    %c0_i32 = arith.constant 0 : i32
    %c0_i32_0 = arith.constant 0 : i32
    %c0_i32_1 = arith.constant 0 : i32
    return %c0_i32, %c0_i32_0 : i32, i32
  }
  func.func @transform_2(%arg0: i32) -> (i32, i32) {
    %c0_i32 = arith.constant 0 : i32
    %c0_i32_0 = arith.constant 0 : i32
    %c0_i32_1 = arith.constant 0 : i32
    return %c0_i32, %c0_i32_0 : i32, i32
  }
  func.func @transform_3(%arg0: i32) -> (i32, i32) {
    %c0_i32 = arith.constant 0 : i32
    %c0_i32_0 = arith.constant 0 : i32
    %c0_i32_1 = arith.constant 0 : i32
    return %c0_i32, %c0_i32_0 : i32, i32
  }
  func.func @transform_4(%arg0: i32) -> (i32, i32) {
    %c0_i32 = arith.constant 0 : i32
    %c0_i32_0 = arith.constant 0 : i32
    %c0_i32_1 = arith.constant 0 : i32
    return %c0_i32, %c0_i32_0 : i32, i32
  }
  func.func @transform_5(%arg0: i32) -> (i32, i32) {
    %c0_i32 = arith.constant 0 : i32
    %c0_i32_0 = arith.constant 0 : i32
    return %arg0, %c0_i32 : i32, i32
  }
}

</mosaic_0001>

<bundles_post_ra>
// kernel: mlp_forward.1
= control target key start
LH: loop header
LB: loop body
LE: loop exit
PB: predicated region body
PF: predicated region fallthrough
CT: control target
= control target key end

     0   :  { %v413_v1 = vmov 0.0   ;;  %vm414_vm0 = vmmov 0   ;;  %vm297_vm1 = vcmask 7168   ;;  %s573_s1 = inlined_call_operand.vmem [shape: bf16[256,128], index: 1, kind: input, shape index: {}]   ;;  %s574_s0 = inlined_call_operand.vmem [shape: f32[8,256], index: 0, kind: input, shape index: {}]   ;;  %s575_s3 = inlined_call_operand.vmem [shape: f32[128,1], index: 3, kind: input, shape index: {}]   ;;  %s576_s4 = inlined_call_operand.<no memory space> [shape: f32[1,1], index: 4, kind: input, shape index: {}]   ;;  %s577_s2 = inlined_call_operand.vmem [shape: f32[1,128], index: 2, kind: input, shape index: {}]   ;;  %s578_s5 = inlined_call_operand.vmem [shape: f32[8,1], index: 5, kind: output, shape index: {}]  }
   0x1   :  { %v397_v0 = vld [vmem:[%s573_s1 + $0x78] sm:$0xff]   ;;  %360 = vmatprep.subr.mxu1 %v413_v1  ;;  %v399_v3 = vld [vmem:[%s573_s1 + $0x70] sm:$0xff]   ;;  %v401_v5 = vld [vmem:[%s573_s1 + $0x68] sm:$0xff]   ;;  %392 = vmatprep.mubr.msk.f32.mxu1 %vm414_vm0, %v413_v1  ;;  %v10_v37 = vstv %s576_s4 }
   0x2   :  { %v398_v2 = vld [vmem:[%s573_s1 + $0x38] sm:$0xff]   ;;  %321 = vmatprep.subr.bf16.mxu0 %v397_v0  ;;  %v400_v4 = vld [vmem:[%s573_s1 + $0x30] sm:$0xff]   ;;  %v402_v6 = vld [vmem:[%s573_s1 + $0x28] sm:$0xff]   ;;  %11 = vst [vmem:[#allocation2] sm:$0x1] %v10_v37 }
   0x3   :  { %322 = vmatpush3.bf16.msra.mxu0 %v398_v2  ;;  %v403_v7 = vld [vmem:[%s573_s1 + $0x60] sm:$0xff]   ;;  %v405_v9 = vld [vmem:[%s573_s1 + $0x58] sm:$0xff]   ;;  %v407_v11 = vld [vmem:[%s573_s1 + $0x50] sm:$0xff]  }
   0x4   :  { %323 = vmatprep.subr.bf16.mxu0 %v399_v3  ;;  %v404_v8 = vld [vmem:[%s573_s1 + $0x20] sm:$0xff]   ;;  %v406_v10 = vld [vmem:[%s573_s1 + $0x18] sm:$0xff]   ;;  %v24_v12 = vld [vmem:[%s574_s0 + $0x8] sm:$0xff] }
   0x5   :  { %v218_v13 = vld [vmem:[%s575_s3 + $0x78] sm:$0xff]  ;;  %v58_v14 = vpack.c.bf16 %v24_v12, %v24_v12  ;;  %v217_v15 = vld [vmem:[%s575_s3 + $0x70] sm:$0xff]  ;;  %v216_v17 = vld [vmem:[%s575_s3 + $0x68] sm:$0xff] }
   0x6   :  { %361 = vmatpush3.msra.mxu1 %v218_v13  ;;  %v408_v16 = vld [vmem:[%s573_s1 + $0x10] sm:$0xff]   ;;  %v409_v18 = vld [vmem:[%s573_s1 + $0x48] sm:$0xff]   ;;  %v215_v19 = vld [vmem:[%s575_s3 + $0x60] sm:$0xff] }
   0x7   :  { %324 = vmatpush3.bf16.msra.mxu0 %v400_v4  ;;  %362 = vmatprep.subr.mxu1 %v413_v1  ;;  %v410_v20 = vld [vmem:[%s573_s1 + $0x8] sm:$0xff]   ;;  %v214_v21 = vld [vmem:[%s575_s3 + $0x58] sm:$0xff]  ;;  %v411_v22 = vld [vmem:[%s573_s1 + $0x40] sm:$0xff]  }
   0x8   :  { %325 = vmatprep.subr.bf16.mxu0 %v401_v5  ;;  %194 = vmatprep.mubr.bf16.mxu0 %v58_v14  ;;  %v213_v23 = vld [vmem:[%s575_s3 + $0x50] sm:$0xff]  ;;  %v412_v24 = vld [vmem:[%s573_s1] sm:$0xff]   ;;  %v212_v26 = vld [vmem:[%s575_s3 + $0x48] sm:$0xff] }
   0x9   :  { %363 = vmatpush3.msra.mxu1 %v217_v15  ;;  %v23_v25 = vld [vmem:[%s574_s0] sm:$0xff]  ;;  %v210_v29 = vld [vmem:[%s575_s3 + $0x38] sm:$0xff]  ;;  %v209_v30 = vld [vmem:[%s575_s3 + $0x30] sm:$0xff] }
   0xa   :  { %364 = vmatprep.subr.mxu1 %v413_v1  ;;  %v211_v27 = vld [vmem:[%s575_s3 + $0x40] sm:$0xff]  ;;  %v57_v28 = vpack.c.bf16 %v23_v25, %v23_v25  ;;  %v208_v31 = vld [vmem:[%s575_s3 + $0x28] sm:$0xff]  ;;  %v206_v33 = vld [vmem:[%s575_s3 + $0x18] sm:$0xff] }
   0xb   :  { %326 = vmatpush3.bf16.msra.mxu0 %v402_v6  ;;  %365 = vmatpush3.msra.mxu1 %v216_v17  ;;  %v207_v32 = vld [vmem:[%s575_s3 + $0x20] sm:$0xff]  ;;  %v205_v34 = vld [vmem:[%s575_s3 + $0x10] sm:$0xff]  ;;  %v204_v35 = vld [vmem:[%s575_s3 + $0x8] sm:$0xff] }
   0xc   :  { %327 = vmatprep.subr.bf16.mxu0 %v403_v7  ;;  %366 = vmatprep.subr.mxu1 %v413_v1  ;;  %v203_v36 = vld [vmem:[%s575_s3] sm:$0xff] }
   0xd   :  { %367 = vmatpush3.msra.mxu1 %v215_v19  ;;  %v303_v39 = vld [vmem:[%s577_s2] ss:$0 sm:$0xff] }
   0xe   :  { %368 = vmatprep.subr.mxu1 %v413_v1  ;;  %v320_v46 = vld [vmem:[#allocation2] ss:$0 sm:$0xff] }
   0xf   :  { %328 = vmatpush3.bf16.msra.mxu0 %v404_v8  ;;  %369 = vmatpush3.msra.mxu1 %v214_v21 }
  0x10   :  { %329 = vmatprep.subr.bf16.mxu0 %v405_v9  ;;  %370 = vmatprep.subr.mxu1 %v413_v1 }
  0x11   :  { %371 = vmatpush3.msra.mxu1 %v213_v23 }
  0x12   :  { %372 = vmatprep.subr.mxu1 %v413_v1 }
  0x13   :  { %330 = vmatpush3.bf16.msra.mxu0 %v406_v10  ;;  %373 = vmatpush3.msra.mxu1 %v212_v26 }
  0x14   :  { %331 = vmatprep.subr.bf16.mxu0 %v407_v11  ;;  %374 = vmatprep.subr.mxu1 %v413_v1 }
  0x15   :  { %375 = vmatpush3.msra.mxu1 %v211_v27 }
  0x16   :  { %376 = vmatprep.subr.mxu1 %v413_v1 }
  0x17   :  { %332 = vmatpush3.bf16.msra.mxu0 %v408_v16  ;;  %377 = vmatpush3.msra.mxu1 %v210_v29 }
  0x18   :  { %333 = vmatprep.subr.bf16.mxu0 %v409_v18  ;;  %378 = vmatprep.subr.mxu1 %v413_v1 }
  0x19   :  { %379 = vmatpush3.msra.mxu1 %v209_v30 }
  0x1a   :  { %380 = vmatprep.subr.mxu1 %v413_v1 }
  0x1b   :  { %334 = vmatpush3.bf16.msra.mxu0 %v410_v20  ;;  %381 = vmatpush3.msra.mxu1 %v208_v31 }
  0x1c   :  { %335 = vmatprep.subr.bf16.mxu0 %v411_v22  ;;  %382 = vmatprep.subr.mxu1 %v413_v1 }
  0x1d   :  { %383 = vmatpush3.msra.mxu1 %v207_v32 }
  0x1e   :  { %384 = vmatprep.subr.mxu1 %v413_v1 }
  0x1f   :  { %336 = vmatpush3.bf16.msra.mxu0 %v412_v24  ;;  %385 = vmatpush3.msra.mxu1 %v206_v33 }
  0x20   :  { %386 = vmatprep.subr.mxu1 %v413_v1 }
  0x21   :  { %387 = vmatpush3.msra.mxu1 %v205_v34 }
  0x22   :  { %195 = vmatmul.mubr.bf16.vlgmr.msra.gmra.mxu0 %v57_v28  ;;  %388 = vmatprep.subr.mxu1 %v413_v1 }
  0x23   :  { %389 = vmatpush3.msra.mxu1 %v204_v35 }
  0x24   :  { %390 = vmatprep.subr.mxu1 %v413_v1 }
  0x25   :  { %391 = vmatpush3.msra.mxu1 %v203_v36 }
  0xe2   :  { %v337_v38 = vpop.f32.mrf.mxu0 }
  0xe4   :  { %v338_v40 = vpop.f32.mrf.mxu0 }
  0xe5   :  { %v339_v41 = vadd.f32 %v338_v40, %v337_v38 }
  0xe6   :  { %v340_v42 = vpop.f32.mrf.mxu0 }
  0xe7   :  { %v197_v43 = vadd.f32 %v339_v41, %v303_v39 }
  0xe8   :  { %v341_v44 = vpop.f32.mrf.mxu0 }
  0xe9   :  { %v202_v45 = vmax.f32 %v197_v43, 0.0 }
  0xeb   :  { %393 = vmatmul.mubr.f32.vlgmr.msra.gmra.mxu1 %v202_v45 }
 0x1ab   :  { %v292_v47 = vpop.f32.mrf.mxu1 }
 0x1ac   :  { %v293_v48 = vadd.f32 %v320_v46, %v292_v47 }
 0x1ad   :  { %v394_v49 = vpop.f32.mrf.mxu1 }
 0x1ae   :  { %v296_v50 = vmax.f32 %v293_v48, 0.0 }
 0x1b0   :  { %298 = vst.msk [vmem:[%s578_s5] sm:$0xff] %vm297_vm1, %v296_v50 }

</bundles_post_ra>
